<compile_context>
chip_gen: v7x
topology: tpu7x:2x2x1
jax: 0.10.0
libtpu: 0.0.40
codegen_flags: <defaults>
</compile_context>

<pallas_src>
from functools import partial

import jax
import jax.numpy as jnp
from jax.experimental import pallas as pl
from jax.experimental.pallas import tpu as pltpu


def _round_up(n, m):
    return ((n + m - 1) // m) * m


# ----------------------------------------------------------------------------
# Kernel
# ----------------------------------------------------------------------------
def final_layer_kernel(
    x_ref,       # (TM, H)        input tokens
    c_ref,       # (TM, H)        conditioning tokens
    w_ada_ref,   # (H, 2*Hp)      fused adaLN weight: cols [:H]=shift, [Hp:Hp+H]=scale
    b_ada_ref,   # (1, 2*Hp)      fused adaLN bias (same layout)
    w_lin_ref,   # (H, Cp)        final linear weight (transposed, C padded to 128)
    b_lin_ref,   # (1, Cp)        final linear bias
    o_ref,       # (TM, Cp)       output (lane-dense)
):
    H = x_ref.shape[1]
    h_pad = w_ada_ref.shape[1] // 2
    w_dtype = w_ada_ref.dtype

    # ---- adaLN modulation: one fused MXU pass over (H, 2*Hp) ----
    # SiLU in f32 for accuracy, then cast to the weight dtype for the MXU.
    c32 = c_ref[...].astype(jnp.float32)
    c_silu = (c32 * jax.nn.sigmoid(c32)).astype(w_dtype)
    ada = jnp.dot(c_silu, w_ada_ref[...], preferred_element_type=jnp.float32)
    ada = ada + b_ada_ref[...].astype(jnp.float32)
    shift = ada[:, :H]                       # lane-aligned (starts at 0)
    scale = ada[:, h_pad:h_pad + H]          # lane-aligned (h_pad % 128 == 0)

    # ---- LayerNorm (eps=1e-6, no affine): two-pass f32 statistics ----
    x32 = x_ref[...].astype(jnp.float32)
    mean = jnp.mean(x32, axis=-1, keepdims=True)
    xc = x32 - mean
    var = jnp.mean(xc * xc, axis=-1, keepdims=True)
    x_norm = xc * jax.lax.rsqrt(var + 1e-6)

    # ---- modulate ----
    mod = (x_norm * (1.0 + scale) + shift).astype(w_dtype)

    # ---- final linear projection (lane-dense output) ----
    out = jnp.dot(mod, w_lin_ref[...], preferred_element_type=jnp.float32)
    out = out + b_lin_ref[...].astype(jnp.float32)
    o_ref[...] = out.astype(o_ref.dtype)


# ----------------------------------------------------------------------------
# One-time parameter preparation (do NOT call per forward pass)
# ----------------------------------------------------------------------------
def prepare_final_layer_params(w_ada, b_ada, w_lin, b_lin):
    """
    w_ada : (2H, H)  PyTorch weight of adaLN_modulation[1] (rows [:H]=shift, [H:]=scale)
    b_ada : (2H,)
    w_lin : (C, H)   PyTorch weight of self.linear
    b_lin : (C,)
    Returns fused/transposed/padded layouts used by the kernel plus true C.
    """
    H = w_ada.shape[1]
    C = w_lin.shape[0]
    h_pad = _round_up(H, 128)
    c_pad = _round_up(C, 128)

    # Fused adaLN weight: (H, 2*h_pad); each half padded to a 128-lane multiple
    # so the in-kernel shift/scale slices are lane-aligned.
    w_ada_t = jnp.zeros((H, 2 * h_pad), w_ada.dtype)
    w_ada_t = w_ada_t.at[:, :H].set(jnp.transpose(w_ada[:H, :]))
    w_ada_t = w_ada_t.at[:, h_pad:h_pad + H].set(jnp.transpose(w_ada[H:, :]))
    b_ada2 = jnp.zeros((1, 2 * h_pad), b_ada.dtype)
    b_ada2 = b_ada2.at[0, :H].set(b_ada[:H])
    b_ada2 = b_ada2.at[0, h_pad:h_pad + H].set(b_ada[H:])

    # Projection weight: (H, c_pad), zero-padded columns => lane-dense stores.
    w_lin_t = jnp.zeros((H, c_pad), w_lin.dtype)
    w_lin_t = w_lin_t.at[:, :C].set(jnp.transpose(w_lin))
    b_lin2 = jnp.zeros((1, c_pad), b_lin.dtype)
    b_lin2 = b_lin2.at[0, :C].set(b_lin)

    return w_ada_t, b_ada2, w_lin_t, b_lin2, C


# ----------------------------------------------------------------------------
# One-time feature / hardware detection (cached in module globals)
# ----------------------------------------------------------------------------
_BUFFERED1_OK = None
_VMEM_CAP_BYTES = None


def _single_buffer_supported():
    """Detect pl.Buffered(1) support once with a tiny probe kernel."""
    global _BUFFERED1_OK
    if _BUFFERED1_OK is None:
        try:
            def _probe(x_ref, o_ref):
                o_ref[...] = x_ref[...]
            out = pl.pallas_call(
                _probe,
                out_shape=jax.ShapeDtypeStruct((8, 128), jnp.float32),
                grid=(1,),
                in_specs=[pl.BlockSpec((8, 128), lambda i: (0, 0),
                                       pipeline_mode=pl.Buffered(1))],
                out_specs=pl.BlockSpec((8, 128), lambda i: (0, 0)),
            )(jnp.zeros((8, 128), jnp.float32))
            jax.block_until_ready(out)
            _BUFFERED1_OK = True
        except Exception:
            _BUFFERED1_OK = False
    return _BUFFERED1_OK


def _vmem_cap_bytes():
    """Per-generation VMEM budget cap (~48 MiB on v7x, ~96 MiB on v5e/v6e)."""
    global _VMEM_CAP_BYTES
    if _VMEM_CAP_BYTES is None:
        try:
            phys = int(pltpu.get_tpu_info().vmem_capacity_bytes)
        except Exception:
            phys = 64 << 20
        _VMEM_CAP_BYTES = max(32 << 20, int(0.75 * phys))
    return _VMEM_CAP_BYTES


# ----------------------------------------------------------------------------
# Jitted forward
# ----------------------------------------------------------------------------
@partial(jax.jit,
         static_argnames=("c_out", "tile_m", "vmem_limit", "single_buffer"))
def _final_layer_jit(x, c, w_ada_t, b_ada2, w_lin_t, b_lin2, *,
                     c_out, tile_m, vmem_limit, single_buffer):
    B, T, H = x.shape
    N = B * T
    h2 = w_ada_t.shape[1]       # 2 * h_pad
    c_pad = w_lin_t.shape[1]

    x2 = x.reshape(N, H)
    c2 = c.reshape(N, H)
    grid = (pl.cdiv(N, tile_m),)    # ragged last tile: writes are masked by Pallas

    if single_buffer:
        def wspec(shape):
            # Constant index_map: DMA'd once; single-buffer halves weight VMEM.
            return pl.BlockSpec(shape, lambda i: (0, 0),
                                pipeline_mode=pl.Buffered(1))
    else:
        def wspec(shape):
            return pl.BlockSpec(shape, lambda i: (0, 0))

    out2 = pl.pallas_call(
        final_layer_kernel,
        out_shape=jax.ShapeDtypeStruct((N, c_pad), x.dtype),
        grid_spec=pltpu.PrefetchScalarGridSpec(
            num_scalar_prefetch=0,
            grid=grid,
            in_specs=[
                pl.BlockSpec((tile_m, H), lambda i: (i, 0)),   # x rows
                pl.BlockSpec((tile_m, H), lambda i: (i, 0)),   # c rows
                wspec((H, h2)),                                # fused adaLN weight
                wspec((1, h2)),                                # fused adaLN bias
                wspec((H, c_pad)),                             # projection weight
                wspec((1, c_pad)),                             # projection bias
            ],
            out_specs=pl.BlockSpec((tile_m, c_pad), lambda i: (i, 0)),
        ),
        compiler_params=pltpu.CompilerParams(
            dimension_semantics=("parallel",),
            vmem_limit_bytes=int(vmem_limit),
        ),
    )(x2, c2, w_ada_t, b_ada2, w_lin_t, b_lin2)

    return out2[:, :c_out].reshape(B, T, c_out)


def final_layer_pallas(x, c, params, *, tile_m=512):
    """
    x, c   : (B, T, H)
    params : output of prepare_final_layer_params(...)
    returns: (B, T, C)
    """
    w_ada_t, b_ada2, w_lin_t, b_lin2, c_out = params
    B, T, H = x.shape
    N = B * T
    h2 = w_ada_t.shape[1]
    c_pad = w_lin_t.shape[1]

    single_buffer = _single_buffer_supported()
    cap = _vmem_cap_bytes()

    w_itemsize = w_ada_t.dtype.itemsize
    x_itemsize = x.dtype.itemsize

    def footprint(tm):
        wb = (H * h2 + h2 + H * c_pad + c_pad) * w_itemsize
        if not single_buffer:
            wb *= 2                                       # double-buffered weights
        rb = 2 * tm * (2 * H + c_pad) * x_itemsize        # x, c, out (2-deep)
        tb = tm * (h2 + 3 * H + c_pad + 8) * 4            # f32 intermediates
        return wb + rb + tb

    # Row tile: multiple of 8 sublanes, no larger than the (rounded-up) row count.
    tile_m = max(8, min(_round_up(tile_m, 8), _round_up(N, 8)))
    # Shrink the row tile if the estimate overflows the per-generation VMEM cap.
    # TODO(synk): column-tile the (H, 2H) adaLN weight for very large H on v7x.
    while tile_m > 128 and footprint(tile_m) > cap:
        tile_m = _round_up(tile_m // 2, 8)

    vmem_limit = min(cap, max(32 << 20, int(1.25 * footprint(tile_m))))

    return _final_layer_jit(x, c, w_ada_t, b_ada2, w_lin_t, b_lin2,
                            c_out=c_out, tile_m=tile_m,
                            vmem_limit=vmem_limit, single_buffer=single_buffer)


# ----------------------------------------------------------------------------
# Plain-JAX reference mirroring the PyTorch forward (f32 math)
# ----------------------------------------------------------------------------
def final_layer_ref(x, c, w_ada, b_ada, w_lin, b_lin):
    H = x.shape[-1]
    x32 = x.astype(jnp.float32)
    c32 = c.astype(jnp.float32)
    c_silu = c32 * jax.nn.sigmoid(c32)
    ada = c_silu @ w_ada.astype(jnp.float32).T + b_ada.astype(jnp.float32)
    shift, scale = ada[..., :H], ada[..., H:]
    mean = jnp.mean(x32, axis=-1, keepdims=True)
    var = jnp.mean((x32 - mean) ** 2, axis=-1, keepdims=True)
    x_norm = (x32 - mean) / jnp.sqrt(var + 1e-6)
    mod = x_norm * (1.0 + scale) + shift
    out = mod @ w_lin.astype(jnp.float32).T + b_lin.astype(jnp.float32)
    return out.astype(x.dtype)


if __name__ == "__main__":
    # ---- test 1: small f32 shapes (module-scale sanity check) ----
    key = jax.random.PRNGKey(0)
    B, T, H, C_out = 2, 8, 32, 16
    k_x, k_c, k_wa, k_ba, k_wl, k_bl = jax.random.split(key, 6)
    x = jax.random.normal(k_x, (B, T, H), dtype=jnp.float32)
    c = jax.random.normal(k_c, (B, T, H), dtype=jnp.float32)
    w_ada = 0.05 * jax.random.normal(k_wa, (2 * H, H), dtype=jnp.float32)
    b_ada = 0.05 * jax.random.normal(k_ba, (2 * H,), dtype=jnp.float32)
    w_lin = 0.05 * jax.random.normal(k_wl, (C_out, H), dtype=jnp.float32)
    b_lin = 0.05 * jax.random.normal(k_bl, (C_out,), dtype=jnp.float32)

    params = prepare_final_layer_params(w_ada, b_ada, w_lin, b_lin)
    out = jax.block_until_ready(final_layer_pallas(x, c, params))
    ref = final_layer_ref(x, c, w_ada, b_ada, w_lin, b_lin)
    assert out.shape == (B, T, C_out)
    assert jnp.allclose(out, ref, atol=2e-4, rtol=2e-4), \
        float(jnp.max(jnp.abs(out - ref)))

    # ---- test 2: bf16 path, N not a tile multiple (ragged last tile, 2-step grid) ----
    B2, T2, H2, C2 = 2, 40, 128, 64
    k2 = jax.random.split(jax.random.PRNGKey(1), 6)
    x_b = jax.random.normal(k2[0], (B2, T2, H2)).astype(jnp.bfloat16)
    c_b = jax.random.normal(k2[1], (B2, T2, H2)).astype(jnp.bfloat16)
    w_ada_b = (0.05 * jax.random.normal(k2[2], (2 * H2, H2))).astype(jnp.bfloat16)
    b_ada_b = (0.05 * jax.random.normal(k2[3], (2 * H2,))).astype(jnp.bfloat16)
    w_lin_b = (0.05 * jax.random.normal(k2[4], (C2, H2))).astype(jnp.bfloat16)
    b_lin_b = (0.05 * jax.random.normal(k2[5], (C2,))).astype(jnp.bfloat16)

    params_b = prepare_final_layer_params(w_ada_b, b_ada_b, w_lin_b, b_lin_b)
    out_b = jax.block_until_ready(final_layer_pallas(x_b, c_b, params_b, tile_m=64))
    ref_b = final_layer_ref(x_b, c_b, w_ada_b, b_ada_b, w_lin_b, b_lin_b)
    assert out_b.shape == (B2, T2, C2)
    err = float(jnp.max(jnp.abs(out_b.astype(jnp.float32) - ref_b.astype(jnp.float32))))
    assert err < 0.1, err

    print("KERNEL_OK")
</pallas_src>

<mosaic_0001>
module attributes {stable_mosaic.version = 11 : i64} {
  func.func @_probe(%arg0: i32, %arg1: memref<8x128xf32, #tpu.memory_space<vmem>>, %arg2: memref<8x128xf32, #tpu.memory_space<vmem>>) attributes {dimension_semantics = [#tpu.dimension_semantics<arbitrary>], iteration_bounds = array<i64: 1>, scalar_prefetch = 0 : i64, scratch_operands = 0 : i64, tpu.core_type = #tpu.core_type<tc>, window_params = [{pipeline_mode = #tpu.pipeline_mode<synchronous>, transform_indices = @transform_0, window_bounds = array<i64: 8, 128>}, {pipeline_mode = #tpu.pipeline_mode<synchronous>, transform_indices = @transform_1, window_bounds = array<i64: 8, 128>}]} {
    %c0 = arith.constant 0 : index
    %c0_0 = arith.constant 0 : index
    %0 = vector.load %arg1[%c0, %c0_0] : memref<8x128xf32, #tpu.memory_space<vmem>>, vector<8x128xf32>
    %c0_1 = arith.constant 0 : index
    %c0_2 = arith.constant 0 : index
    %1 = vector.load %arg2[%c0_1, %c0_2] : memref<8x128xf32, #tpu.memory_space<vmem>>, vector<8x128xf32>
    tpu.vector_store %arg2[%c0_1, %c0_2], %0 {strides = array<i32>} : memref<8x128xf32, #tpu.memory_space<vmem>>, vector<8x128xf32>,
    return
  }
  func.func @transform_0(%arg0: i32) -> (i32, i32) {
    %c0_i32 = arith.constant 0 : i32
    %c0_i32_0 = arith.constant 0 : i32
    %c0_i32_1 = arith.constant 0 : i32
    return %c0_i32, %c0_i32_0 : i32, i32
  }
  func.func @transform_1(%arg0: i32) -> (i32, i32) {
    %c0_i32 = arith.constant 0 : i32
    %c0_i32_0 = arith.constant 0 : i32
    %c0_i32_1 = arith.constant 0 : i32
    return %c0_i32, %c0_i32_0 : i32, i32
  }
}

module attributes {stable_mosaic.version = 11 : i64} {
  func.func @final_layer_kernel(%arg0: i32, %arg1: memref<16x32xf32, #tpu.memory_space<vmem>>, %arg2: memref<16x32xf32, #tpu.memory_space<vmem>>, %arg3: memref<32x256xf32, #tpu.memory_space<vmem>>, %arg4: memref<1x256xf32, #tpu.memory_space<vmem>>, %arg5: memref<32x128xf32, #tpu.memory_space<vmem>>, %arg6: memref<1x128xf32, #tpu.memory_space<vmem>>, %arg7: memref<16x128xf32, #tpu.memory_space<vmem>>) attributes {dimension_semantics = [#tpu.dimension_semantics<parallel>], iteration_bounds = array<i64: 1>, scalar_prefetch = 0 : i64, scratch_operands = 0 : i64, tpu.core_type = #tpu.core_type<tc>, window_params = [{transform_indices = @transform_0, window_bounds = array<i64: 16, 32>}, {transform_indices = @transform_1, window_bounds = array<i64: 16, 32>}, {pipeline_mode = #tpu.pipeline_mode<synchronous>, transform_indices = @transform_2, window_bounds = array<i64: 32, 256>}, {pipeline_mode = #tpu.pipeline_mode<synchronous>, transform_indices = @transform_3, window_bounds = array<i64: 1, 256>}, {pipeline_mode = #tpu.pipeline_mode<synchronous>, transform_indices = @transform_4, window_bounds = array<i64: 32, 128>}, {pipeline_mode = #tpu.pipeline_mode<synchronous>, transform_indices = @transform_5, window_bounds = array<i64: 1, 128>}, {transform_indices = @transform_6, window_bounds = array<i64: 16, 128>}]} {
    %c0 = arith.constant 0 : index
    %c0_0 = arith.constant 0 : index
    %0 = vector.load %arg2[%c0, %c0_0] : memref<16x32xf32, #tpu.memory_space<vmem>>, vector<16x32xf32>
    %1 = arith.negf %0 : vector<16x32xf32>
    %2 = math.exp %1 : vector<16x32xf32>
    %cst = arith.constant 1.000000e+00 : f32
    %3 = vector.broadcast %cst : f32 to vector<16x32xf32>
    %4 = arith.addf %3, %2 : vector<16x32xf32>
    %5 = arith.divf %3, %4 : vector<16x32xf32>
    %6 = arith.mulf %0, %5 : vector<16x32xf32>
    %c0_1 = arith.constant 0 : index
    %c0_2 = arith.constant 0 : index
    %7 = vector.load %arg3[%c0_1, %c0_2] : memref<32x256xf32, #tpu.memory_space<vmem>>, vector<32x256xf32>
    %cst_3 = arith.constant dense<0.000000e+00> : vector<16x256xf32>
    %8 = tpu.matmul %6, %7, %cst_3 {dimension_numbers = #tpu.dot_dimension_numbers<[1], [0], [0], [1], [0, 0, 1, 1], [], []>} : vector<16x32xf32>, vector<32x256xf32>, vector<16x256xf32> -> vector<16x256xf32>
    %c0_4 = arith.constant 0 : index
    %c0_5 = arith.constant 0 : index
    %9 = vector.load %arg4[%c0_4, %c0_5] : memref<1x256xf32, #tpu.memory_space<vmem>>, vector<1x256xf32>
    %10 = vector.broadcast %9 : vector<1x256xf32> to vector<16x256xf32>
    %11 = arith.addf %8, %10 : vector<16x256xf32>
    %12 = vector.extract_strided_slice %11 {offsets = [0, 0], sizes = [16, 32], strides = [1, 1]} : vector<16x256xf32> to vector<16x32xf32>
    %13 = vector.extract_strided_slice %11 {offsets = [0, 128], sizes = [16, 32], strides = [1, 1]} : vector<16x256xf32> to vector<16x32xf32>
    %c0_6 = arith.constant 0 : index
    %c0_7 = arith.constant 0 : index
    %14 = vector.load %arg1[%c0_6, %c0_7] : memref<16x32xf32, #tpu.memory_space<vmem>>, vector<16x32xf32>
    %cst_8 = arith.constant dense<0.000000e+00> : vector<16xf32>
    %15 = vector.multi_reduction <add>, %14, %cst_8 [1] : vector<16x32xf32> to vector<16xf32>
    %16 = vector.shape_cast %15 : vector<16xf32> to vector<16x1xf32>
    %cst_9 = arith.constant 3.200000e+01 : f32
    %17 = vector.broadcast %cst_9 : f32 to vector<16x1xf32>
    %18 = arith.divf %16, %17 : vector<16x1xf32>
    %19 = vector.broadcast %18 : vector<16x1xf32> to vector<16x32xf32>
    %20 = arith.subf %14, %19 : vector<16x32xf32>
    %21 = arith.mulf %20, %20 : vector<16x32xf32>
    %cst_10 = arith.constant dense<0.000000e+00> : vector<16xf32>
    %22 = vector.multi_reduction <add>, %21, %cst_10 [1] : vector<16x32xf32> to vector<16xf32>
    %23 = vector.shape_cast %22 : vector<16xf32> to vector<16x1xf32>
    %cst_11 = arith.constant 3.200000e+01 : f32
    %24 = vector.broadcast %cst_11 : f32 to vector<16x1xf32>
    %25 = arith.divf %23, %24 : vector<16x1xf32>
    %cst_12 = arith.constant 9.99999997E-7 : f32
    %26 = vector.broadcast %cst_12 : f32 to vector<16x1xf32>
    %27 = arith.addf %25, %26 : vector<16x1xf32>
    %28 = math.rsqrt %27 : vector<16x1xf32>
    %29 = vector.broadcast %28 : vector<16x1xf32> to vector<16x32xf32>
    %30 = arith.mulf %20, %29 : vector<16x32xf32>
    %cst_13 = arith.constant 1.000000e+00 : f32
    %31 = vector.broadcast %cst_13 : f32 to vector<16x32xf32>
    %32 = arith.addf %31, %13 : vector<16x32xf32>
    %33 = arith.mulf %30, %32 : vector<16x32xf32>
    %34 = arith.addf %33, %12 : vector<16x32xf32>
    %c0_14 = arith.constant 0 : index
    %c0_15 = arith.constant 0 : index
    %35 = vector.load %arg5[%c0_14, %c0_15] : memref<32x128xf32, #tpu.memory_space<vmem>>, vector<32x128xf32>
    %cst_16 = arith.constant dense<0.000000e+00> : vector<16x128xf32>
    %36 = tpu.matmul %34, %35, %cst_16 {dimension_numbers = #tpu.dot_dimension_numbers<[1], [0], [0], [1], [0, 0, 1, 1], [], []>} : vector<16x32xf32>, vector<32x128xf32>, vector<16x128xf32> -> vector<16x128xf32>
    %c0_17 = arith.constant 0 : index
    %c0_18 = arith.constant 0 : index
    %37 = vector.load %arg6[%c0_17, %c0_18] : memref<1x128xf32, #tpu.memory_space<vmem>>, vector<1x128xf32>
    %38 = vector.broadcast %37 : vector<1x128xf32> to vector<16x128xf32>
    %39 = arith.addf %36, %38 : vector<16x128xf32>
    %c0_19 = arith.constant 0 : index
    %c0_20 = arith.constant 0 : index
    %40 = vector.load %arg7[%c0_19, %c0_20] : memref<16x128xf32, #tpu.memory_space<vmem>>, vector<16x128xf32>
    tpu.vector_store %arg7[%c0_19, %c0_20], %39 {strides = array<i32>} : memref<16x128xf32, #tpu.memory_space<vmem>>, vector<16x128xf32>,
    return
  }
  func.func @transform_0(%arg0: i32) -> (i32, i32) {
    %c0_i32 = arith.constant 0 : i32
    %c0_i32_0 = arith.constant 0 : i32
    return %arg0, %c0_i32 : i32, i32
  }
  func.func @transform_1(%arg0: i32) -> (i32, i32) {
    %c0_i32 = arith.constant 0 : i32
    %c0_i32_0 = arith.constant 0 : i32
    return %arg0, %c0_i32 : i32, i32
  }
  func.func @transform_2(%arg0: i32) -> (i32, i32) {
    %c0_i32 = arith.constant 0 : i32
    %c0_i32_0 = arith.constant 0 : i32
    %c0_i32_1 = arith.constant 0 : i32
    return %c0_i32, %c0_i32_0 : i32, i32
  }
  func.func @transform_3(%arg0: i32) -> (i32, i32) {
    %c0_i32 = arith.constant 0 : i32
    %c0_i32_0 = arith.constant 0 : i32
    %c0_i32_1 = arith.constant 0 : i32
    return %c0_i32, %c0_i32_0 : i32, i32
  }
  func.func @transform_4(%arg0: i32) -> (i32, i32) {
    %c0_i32 = arith.constant 0 : i32
    %c0_i32_0 = arith.constant 0 : i32
    %c0_i32_1 = arith.constant 0 : i32
    return %c0_i32, %c0_i32_0 : i32, i32
  }
  func.func @transform_5(%arg0: i32) -> (i32, i32) {
    %c0_i32 = arith.constant 0 : i32
    %c0_i32_0 = arith.constant 0 : i32
    %c0_i32_1 = arith.constant 0 : i32
    return %c0_i32, %c0_i32_0 : i32, i32
  }
  func.func @transform_6(%arg0: i32) -> (i32, i32) {
    %c0_i32 = arith.constant 0 : i32
    %c0_i32_0 = arith.constant 0 : i32
    return %arg0, %c0_i32 : i32, i32
  }
}

</mosaic_0001>

<bundles_post_ra>
// kernel: tpu_custom_call.1
= control target key start
LH: loop header
LB: loop body
LE: loop exit
PB: predicated region body
PF: predicated region fallthrough
CT: control target
= control target key end

     0   :  { %6 = vsyncpa [#allocation3], 0  ;;  %s124_s0 = inlined_call_operand.hbm [shape: f32[8,128], index: 0, kind: input, shape index: {}]   ;;  %s125_s1 = inlined_call_operand.hbm [shape: f32[8,128], index: 1, kind: output, shape index: {}]  }
   0x1   :  { %7 = vsyncpa [#allocation4], 0  ;;  %s88_s6 = smov [#allocation2]   ;;  %s40_s10 = scalar_lea.hbm %s124_s0, 128 }
   0x2   :  { %s14_s7 = sshll.u32 %s88_s6, 4  ;;  %p41_p0 = scmp.ne.s32.totalorder %s124_s0, %s40_s10  ;;  %s15_s7 = int_to_ptr.vmem [resolvable:$true] %s14_s7 }
   0x3   :  { %p44_p1 = scmp.lt.u32.totalorder %s40_s10, %s124_s0 }
   0x5   :  { %p46_p2 = pnand %p44_p1, %p41_p0 }
   0x7   :  { %49 = shalt.err (!%p46_p2)
}
   0x8   :  { %s50_s15 = scalar_lea.vmem %s15_s7, 128  ;;  %p55_p4 = scmp.lt.s32.totalorder %s15_s7, %s15_s7 }
   0x9   :  { %p51_p3 = scmp.ne.s32.totalorder %s15_s7, %s50_s15  ;;  %p56_p5 = scmp.lt.s32.totalorder %s50_s15, %s50_s15 }
   0xb   :  { %p57_p6 = por %p56_p5, %p55_p4 }
   0xd   :  { %p58_p7 = pnand %p57_p6, %p51_p3 }
   0xf   :  { %61 = shalt.err (!%p58_p7)
}
  0x10   :  { %17 = dma.hbm_to_vmem [thread:$0]  %s124_s0, 128, %s15_s7, [#allocation3]  }
  0x11   :  { %84 = dma.done.wait [#allocation3], 128  }
  0x12   :  { %85 = vsyncadd [#allocation3], 4294967168  ;;  %s89_s18 = smov [#allocation5]   ;;  %v21_v0 = vld [vmem:[#allocation2] sm:$0xff] }
  0x13   :  { %s29_s19 = sshll.u32 %s89_s18, 4  ;;  %22 = vst [vmem:[#allocation5] sm:$0xff] %v21_v0  ;;  %s30_s19 = int_to_ptr.vmem [resolvable:$true] %s29_s19 }
  0x14   :  { %s62_s20 = scalar_lea.vmem %s30_s19, 128  ;;  %p67_p9 = scmp.lt.s32.totalorder %s30_s19, %s30_s19 }
  0x15   :  { %p63_p8 = scmp.ne.s32.totalorder %s30_s19, %s62_s20  ;;  %p68_p10 = scmp.lt.s32.totalorder %s62_s20, %s62_s20 }
  0x17   :  { %p69_p11 = por %p68_p10, %p67_p9 }
  0x19   :  { %p70_p12 = pnand %p69_p11, %p63_p8 }
  0x1b   :  { %73 = shalt.err (!%p70_p12)
}
  0x1c   :  { %s74_s23 = scalar_lea.hbm %s125_s1, 128 }
  0x1d   :  { %p75_p13 = scmp.ne.s32.totalorder %s125_s1, %s74_s23  ;;  %p78_p0 = scmp.lt.u32.totalorder %s74_s23, %s125_s1 }
  0x1f   :  { %p80_p1 = pnand %p78_p0, %p75_p13 }
  0x21   :  { %83 = shalt.err (!%p80_p1)
}
  0x22   :  { %32 = dma.vmem_to_hbm [thread:$0]  %s30_s19, 128, %s125_s1, [#allocation4]  }
  0x23   :  { %86 = dma.done.wait [#allocation4], 128  }
  0x24   :  { %87 = vsyncadd [#allocation4], 4294967168 }
  0x25   :  { %36 = vsyncpa [#allocation3], 1 }
  0x26   :  { %37 = vsyncpa [#allocation4], 1 }

// kernel: _final_layer_jit.1
= control target key start
LH: loop header
LB: loop body
LE: loop exit
PB: predicated region body
PF: predicated region fallthrough
CT: control target
= control target key end

     0   :  { %11 = vsyncpa [#allocation3], 0  ;;  %s617_s0 = inlined_call_operand.hbm [shape: f32[16,32], index: 0, kind: input, shape index: {}]   ;;  %s618_s1 = inlined_call_operand.hbm [shape: f32[16,32], index: 1, kind: input, shape index: {}]   ;;  %s619_s2 = inlined_call_operand.hbm [shape: f32[32,256], index: 2, kind: input, shape index: {}]   ;;  %s620_s3 = inlined_call_operand.vmem [shape: f32[1,256], index: 3, kind: input, shape index: {}]   ;;  %s621_s4 = inlined_call_operand.hbm [shape: f32[32,128], index: 4, kind: input, shape index: {}]   ;;  %s622_s5 = inlined_call_operand.vmem [shape: f32[1,128], index: 5, kind: input, shape index: {}]   ;;  %s623_s6 = inlined_call_operand.vmem [shape: f32[16,128], index: 6, kind: output, shape index: {}]  }
   0x1   :  { %12 = vsyncpa [#allocation5], 0 }
   0x2   :  { %13 = vsyncpa [#allocation8], 0  ;;  %s489_s21 = smov [#allocation4]   ;;  %s490_s23 = smov [#allocation2]  }
   0x3   :  { %s31_s22 = sshll.u32 %s489_s21, 4  ;;  %s19_s24 = sshll.u32 %s490_s23, 4  ;;  %s32_s22 = int_to_ptr.vmem [resolvable:$true] %s31_s22  ;;  %s533_s24 = int_to_ptr.vmem [resolvable:$true] %s19_s24 }
   0x4   :  { %s395_s27 = scalar_lea.hbm %s618_s1, 256 }
   0x5   :  { %p396_p0 = scmp.ne.s32.totalorder %s618_s1, %s395_s27  ;;  %p399_p1 = scmp.lt.u32.totalorder %s395_s27, %s618_s1 }
   0x7   :  { %p401_p2 = pnand %p399_p1, %p396_p0 }
   0x9   :  { %404 = shalt.err (!%p401_p2)
}
   0xa   :  { %s405_s8 = scalar_lea.vmem %s32_s22, 256  ;;  %p410_p4 = scmp.lt.s32.totalorder %s32_s22, %s32_s22 }
   0xb   :  { %p406_p3 = scmp.ne.s32.totalorder %s32_s22, %s405_s8  ;;  %p411_p5 = scmp.lt.s32.totalorder %s405_s8, %s405_s8 }
   0xd   :  { %p412_p6 = por %p411_p5, %p410_p4 }
   0xf   :  { %p413_p7 = pnand %p412_p6, %p406_p3 }
  0x11   :  { %416 = shalt.err (!%p413_p7)
}
  0x12   :  { %s491_s9 = smov 128   ;;  %s492_s10 = smov 8  }
  0x13   :  { %37 = dma.hbm_to_vmem [thread:$0]  %s618_s1, 256, %s32_s22, [#allocation5], %s491_s9, %s491_s9, %s492_s10  }
  0x14   :  { %s417_s15 = scalar_lea.hbm %s617_s0, 256 }
  0x15   :  { %p418_p8 = scmp.ne.s32.totalorder %s617_s0, %s417_s15  ;;  %p421_p9 = scmp.lt.u32.totalorder %s417_s15, %s617_s0 }
  0x17   :  { %p423_p10 = pnand %p421_p9, %p418_p8 }
  0x19   :  { %426 = shalt.err (!%p423_p10)
}
  0x1a   :  { %s427_s20 = scalar_lea.vmem %s533_s24, 256  ;;  %p432_p12 = scmp.lt.s32.totalorder %s533_s24, %s533_s24 }
  0x1b   :  { %p428_p11 = scmp.ne.s32.totalorder %s533_s24, %s427_s20  ;;  %p433_p13 = scmp.lt.s32.totalorder %s427_s20, %s427_s20 }
  0x1d   :  { %p434_p0 = por %p433_p13, %p432_p12 }
  0x1f   :  { %p435_p1 = pnand %p434_p0, %p428_p11 }
  0x21   :  { %438 = shalt.err (!%p435_p1)
}
  0x22   :  { %25 = dma.hbm_to_vmem [thread:$0]  %s617_s0, 256, %s533_s24, [#allocation3], %s491_s9, %s491_s9, %s492_s10  }
  0x23   :  { %s493_s22 = smov [#allocation6]   ;;  %s439_s27 = scalar_lea.hbm %s619_s2, 1024 }
  0x24   :  { %s43_s23 = sshll.u32 %s493_s22, 4  ;;  %p440_p2 = scmp.ne.s32.totalorder %s619_s2, %s439_s27  ;;  %s44_s23 = int_to_ptr.vmem [resolvable:$true] %s43_s23 }
  0x25   :  { %p443_p3 = scmp.lt.u32.totalorder %s439_s27, %s619_s2 }
  0x27   :  { %p445_p4 = pnand %p443_p3, %p440_p2 }
  0x29   :  { %448 = shalt.err (!%p445_p4)
}
  0x2a   :  { %s449_s8 = scalar_lea.vmem %s44_s23, 1024  ;;  %p454_p6 = scmp.lt.s32.totalorder %s44_s23, %s44_s23 }
  0x2b   :  { %p450_p5 = scmp.ne.s32.totalorder %s44_s23, %s449_s8  ;;  %p455_p7 = scmp.lt.s32.totalorder %s449_s8, %s449_s8 }
  0x2d   :  { %p456_p8 = por %p455_p7, %p454_p6 }
  0x2f   :  { %p457_p9 = pnand %p456_p8, %p450_p5 }
  0x31   :  { %460 = shalt.err (!%p457_p9)
}
  0x32   :  { %s494_s0 = smov 256   ;;  %s495_s24 = smov 16  }
  0x33   :  { %49 = dma.hbm_to_vmem [thread:$0]  %s619_s2, 1024, %s44_s23, [#allocation5], %s494_s0, %s494_s0, %s495_s24  }
  0x34   :  { %s496_s13 = smov [#allocation7]   ;;  %s461_s17 = scalar_lea.hbm %s621_s4, 512 }
  0x35   :  { %s57_s14 = sshll.u32 %s496_s13, 4  ;;  %p462_p10 = scmp.ne.s32.totalorder %s621_s4, %s461_s17  ;;  %s58_s14 = int_to_ptr.vmem [resolvable:$true] %s57_s14 }
  0x36   :  { %p465_p11 = scmp.lt.u32.totalorder %s461_s17, %s621_s4 }
  0x38   :  { %p467_p12 = pnand %p465_p11, %p462_p10 }
  0x3a   :  { %470 = shalt.err (!%p467_p12)
}
  0x3b   :  { %s471_s21 = scalar_lea.vmem %s58_s14, 512  ;;  %p476_p0 = scmp.lt.s32.totalorder %s58_s14, %s58_s14 }
  0x3c   :  { %p472_p13 = scmp.ne.s32.totalorder %s58_s14, %s471_s21  ;;  %p477_p1 = scmp.lt.s32.totalorder %s471_s21, %s471_s21 }
  0x3e   :  { %p478_p2 = por %p477_p1, %p476_p0 }
  0x40   :  { %p479_p3 = pnand %p478_p2, %p472_p13 }
  0x42   :  { %482 = shalt.err (!%p479_p3)
}
  0x43   :  { %63 = dma.hbm_to_vmem [thread:$0]  %s621_s4, 512, %s58_s14, [#allocation8], %s491_s9, %s491_s9, %s492_s10  }
  0x44   :  { %483 = dma.done.wait [#allocation3], 256  }
  0x45   :  { %484 = vsyncadd [#allocation3], 4294967040 }
  0x46   :  { %485 = dma.done.wait [#allocation5], 1280  }
  0x47   :  { %486 = vsyncadd [#allocation5], 4294966016 }
  0x48   :  { %487 = dma.done.wait [#allocation8], 512  }
  0x49   :  { %488 = vsyncadd [#allocation8], 4294966784  ;;  %v497_v0 = vmov 0.0   ;;  %vm114_vm0 = vcmask 261120   ;;  %v198_v1 = vld [vmem:[#allocation2] sm:$0xff]  ;;  %v199_v2 = vld [vmem:[#allocation2 + $0x8] sm:$0xff]  ;;  %v104_v49 = vlaneseq }
  0x4a   :  { %185 = vmatprep.mubr.f32.mxu0 %v497_v0  ;;  %v95_v3 = vld [vmem:[#allocation6 + $0x8] sm:$0xff]  ;;  %v200_v4 = vsel %vm114_vm0, %v198_v1, 0.0  ;;  %v97_v5 = vld [vmem:[#allocation6 + $0x18] sm:$0xff]  ;;  %v94_v6 = vld [vmem:[#allocation6] sm:$0xff]  ;;  %v203_v13 = vsel %vm114_vm0, %v199_v2, 0.0 }
  0x4b   :  { %v96_v7 = vld [vmem:[#allocation6 + $0x10] sm:$0xff]  ;;  %201 = vadd.xlane.f32.xlu0 %v200_v4  ;;  %v358_v8 = vpack.c.bf16 %v97_v5, %v95_v3  ;;  %v99_v10 = vld [vmem:[#allocation6 + $0x28] sm:$0xff]  ;;  %v101_v11 = vld [vmem:[#allocation6 + $0x38] sm:$0xff]  ;;  %v105_v50 = vshrl.u32 %v104_v49, 7 }
  0x4c   :  { %v360_v9 = vpack.c.bf16 %v96_v7, %v94_v6  ;;  %v98_v12 = vld [vmem:[#allocation6 + $0x20] sm:$0xff]  ;;  %v362_v14 = vpack.c.bf16 %v101_v11, %v99_v10  ;;  %v100_v15 = vld [vmem:[#allocation6 + $0x30] sm:$0xff]  ;;  %v79_v17 = vld [vmem:[#allocation4 + $0x8] sm:$0xff] }
  0x4d   :  { %v78_v16 = vld [vmem:[#allocation4] sm:$0xff]  ;;  %359 = vmatprep.subr.bf16.mxu0 %v358_v8  ;;  %v335_v19 = vmul.f32 -1.442695, %v79_v17  ;;  %v364_v20 = vpack.c.bf16 %v100_v15, %v98_v12  ;;  %v233_v39 = vld [vmem:[#allocation7] sm:$0xff]  ;;  %v234_v40 = vld [vmem:[#allocation7 + $0x8] sm:$0xff]  ;;  %v110_v53 = vsub.s32 1, %v105_v50 }
  0x4e   :  { %v334_v18 = vmul.f32 -1.442695, %v78_v16  ;;  %361 = vmatpush1.bf16.msra.mxu0 %v360_v9  ;;  %v366_v41 = vpack.c.bf16 %v234_v40, %v233_v39  ;;  %v235_v42 = vld [vmem:[#allocation7 + $0x10] sm:$0xff]  ;;  %v236_v43 = vld [vmem:[#allocation7 + $0x18] sm:$0xff]  ;;  %v102_v55 = vld [vmem:[%s620_s3] sm:$0x3] }
  0x4f   :  { %204 = vadd.xlane.f32.xlu0 %v203_v13  ;;  %363 = vmatprep.subr.bf16.mxu0 %v362_v14  ;;  %v370_v44 = vpack.c.bf16 %v236_v43, %v235_v42  ;;  %v111_v58 = vrot.slane %v102_v55, %v110_v53  ;;  %v106_v60 = vsub.s32 0, %v105_v50  ;;  %v338_v12 = vld [vmem:[%s622_s5] ss:$0 sm:$0xff] }
  0x50   :  { %383 = vpow2.f32 %v334_v18  ;;  %367 = vmatprep.subr.bf16.mxu1 %v366_v41 }
  0x51   :  { %385 = vpow2.f32 %v335_v19  ;;  %369 = vmatpush3.bf16.msra.mxu1 %v366_v41  ;;  %v107_v62 = vrot.slane %v102_v55, %v106_v60 }
  0x52   :  { %365 = vmatpush1.bf16.msra.mxu0 %v364_v20  ;;  %371 = vmatprep.subr.bf16.mxu1 %v370_v44 }
  0x55   :  { %373 = vmatpush3.bf16.msra.mxu1 %v370_v44 }
  0x5a   :  { %v384_v21 = vpop.eup %383 }
  0x5b   :  { %v386_v22 = vpop.eup %385  ;;  %v86_v23 = vadd.f32 1.0, %v384_v21 }
  0x5c   :  { %v87_v24 = vadd.f32 1.0, %v386_v22 }
  0x5d   :  { %387 = vrcp.f32 %v86_v23 }
  0x5e   :  { %389 = vrcp.f32 %v87_v24 }
  0x67   :  { %v388_v25 = vpop.eup %387 }
  0x68   :  { %v390_v26 = vpop.eup %389  ;;  %v92_v27 = vmul.f32 %v388_v25, %v78_v16 }
  0x69   :  { %v93_v28 = vmul.f32 %v390_v26, %v79_v17 }
  0x6a   :  { %336 = vmatmul.mubr.msk.f32.vlgmr.msra.gmra.mrb[0].mxu0 %vm114_vm0, %v92_v27 }
  0x6b   :  { %191 = vmatprep.mubr.f32.mxu0 %v497_v0 }
  0x6e   :  { %337 = vmatmul.mubr.msk.f32.gmra.mrb[2].mxu0 %vm114_vm0, %v93_v28 }
  0xd8   :  { %v202_v29 = vpop.xlane.xlu0 %201 }
  0xd9   :  { %v207_v30 = vmul.f32 0.03125, %v202_v29 }
  0xdb   :  { %v209_v31 = vsub.f32 %v198_v1, %v207_v30 }
  0xdc   :  { %v205_v32 = vpop.xlane.xlu0 %204 }
  0xdd   :  { %v208_v33 = vmul.f32 0.03125, %v205_v32  ;;  %v211_v34 = vmul.f32 %v209_v31, %v209_v31 }
  0xdf   :  { %v210_v35 = vsub.f32 %v199_v2, %v208_v33  ;;  %v213_v36 = vsel %vm114_vm0, %v211_v34, 0.0 }
  0xe0   :  { %214 = vadd.xlane.f32.xlu1 %v213_v36 }
  0xe1   :  { %v212_v37 = vmul.f32 %v210_v35, %v210_v35 }
  0xe3   :  { %v216_v38 = vsel %vm114_vm0, %v212_v37, 0.0 }
  0xe4   :  { %217 = vadd.xlane.f32.xlu1 %v216_v38 }
 0x13d   :  { %v187_v45 = vpop.f32.mrb[0].mxu0 }
 0x13e   :  { %v189_v46 = vpop.f32.mrb[1].mxu0  ;;  %v188_v3 = vadd.f32 %v187_v45, %v107_v62 }
 0x13f   :  { %v190_v61 = vadd.f32 %v189_v46, %v111_v58 }
 0x141   :  { %v193_v47 = vpop.f32.mrb[2].mxu0  ;;  %v227_v63 = vadd.f32 1.0, %v190_v61 }
 0x142   :  { %v195_v48 = vpop.f32.mrb[3].mxu0  ;;  %v194_v9 = vadd.f32 %v193_v47, %v107_v62 }
 0x143   :  { %v196_v0 = vadd.f32 %v195_v48, %v111_v58 }
 0x145   :  { %v228_v5 = vadd.f32 1.0, %v196_v0 }
 0x16d   :  { %v215_v51 = vpop.xlane.xlu1 %214 }
 0x16e   :  { %v219_v52 = vmul.f32 0.03125, %v215_v51 }
 0x170   :  { %v221_v54 = vadd.f32 1e-06, %v219_v52 }
 0x171   :  { %v218_v56 = vpop.xlane.xlu1 %217 }
 0x172   :  { %391 = vrsqrt.f32 %v221_v54  ;;  %v220_v57 = vmul.f32 0.03125, %v218_v56 }
 0x174   :  { %v222_v59 = vadd.f32 1e-06, %v220_v57 }
 0x176   :  { %393 = vrsqrt.f32 %v222_v59 }
 0x17c   :  { %v392_v1 = vpop.eup %391 }
 0x17d   :  { %v225_v2 = vmul.f32 %v392_v1, %v209_v31 }
 0x17f   :  { %v229_v4 = vmul.f32 %v227_v63, %v225_v2 }
 0x180   :  { %v394_v6 = vpop.eup %393 }
 0x181   :  { %v226_v7 = vmul.f32 %v394_v6, %v210_v35  ;;  %v231_v8 = vadd.f32 %v229_v4, %v188_v3 }
 0x183   :  { %v230_v10 = vmul.f32 %v228_v5, %v226_v7  ;;  %355 = vmatprep.mubr.msk.f32.mxu1 %vm114_vm0, %v231_v8 }
 0x185   :  { %v232_v11 = vadd.f32 %v230_v10, %v194_v9 }
 0x187   :  { %356 = vmatmul.mubr.msk.f32.vlgmr.msra.gmra.mrb[0].mxu1 %vm114_vm0, %v232_v11 }
 0x25a   :  { %v357_v13 = vpop.f32.mrb[0].mxu1 }
 0x25b   :  { %v322_v14 = vadd.f32 %v357_v13, %v338_v12  ;;  %v316_v15 = vpop.f32.mrb[1].mxu1 }
 0x25c   :  { %v317_v16 = vadd.f32 %v338_v12, %v316_v15 }
 0x25d   :  { %326 = vst [vmem:[%s623_s6 + $0x8] sm:$0xff] %v322_v14 }
 0x25e   :  { %325 = vst [vmem:[%s623_s6] sm:$0xff] %v317_v16 }
 0x25f   :  { %331 = vsyncpa [#allocation3], 1 }
 0x260   :  { %332 = vsyncpa [#allocation5], 1 }
 0x261   :  { %333 = vsyncpa [#allocation8], 1 }

</bundles_post_ra>
